<compile_context>
chip_gen: v5e
topology: v5e:2x2
jax: 0.10.0
libtpu: 0.0.40
codegen_flags: <defaults>
</compile_context>

<pallas_src>
import functools
import math

import jax
import jax.numpy as jnp
from jax import lax
from jax.experimental import pallas as pl
from jax.experimental.pallas import tpu as pltpu


# ------------------------------ helpers -------------------------------------

def _row_block(n, cap=256):
    """Largest convenient row tile that exactly divides n (or the full array)."""
    if n <= cap:
        return n
    for b in (cap, 128, 64, 32, 16, 8):
        if n % b == 0:
            return b
    return n  # fall back to a single full-array block


# ----------------------------- Pallas kernels --------------------------------

def _kvq_proj_kernel(x_ref, wt_ref, b_ref, o_ref):
    # x: (br, in_dim) bf16, wt: (in_dim, 3*out) bf16, b: (1, 3*out) f32
    acc = jnp.dot(x_ref[...], wt_ref[...], preferred_element_type=jnp.float32)
    o_ref[...] = (acc + b_ref[...]).astype(o_ref.dtype)


def _hgt_edge_kernel(kvq_d_ref, kvq_s_ref, att_ref, msg_ref, adj_ref, o_ref,
                     *, n_heads, d_k, out_dim):
    # kvq_d: (bd, 3*out) bf16 [k|v|q of dst nodes], kvq_s: (Ns, 3*out) bf16,
    # att/msg: (out, out) bf16 block-diagonal (pri/sqrt_dk folded into att),
    # adj: (bd, Ns) bf16 0/1, o: (bd, out) bf16.
    q = kvq_d_ref[:, pl.ds(2 * out_dim, out_dim)]        # (bd, out)
    k = kvq_s_ref[:, pl.ds(0, out_dim)]                  # (Ns, out)
    v = kvq_s_ref[:, pl.ds(out_dim, out_dim)]            # (Ns, out)

    # Full-width relation transforms on the MXU (single matmul for all heads).
    k2 = jnp.dot(k, att_ref[...], preferred_element_type=jnp.bfloat16)   # (Ns, out)
    v2 = jnp.dot(v, msg_ref[...], preferred_element_type=jnp.bfloat16)   # (Ns, out)

    mask = adj_ref[...] > 0                              # (bd, Ns) bool

    head_outs = []
    for h in range(n_heads):
        lo, hi = h * d_k, (h + 1) * d_k
        # scores[dst, src] = q_h[dst] . k2_h[src]  (contract last dims, no .T)
        s = lax.dot_general(q[:, lo:hi], k2[:, lo:hi],
                            (((1,), (1,)), ((), ())),
                            preferred_element_type=jnp.float32)          # (bd, Ns)
        # masked edge-softmax over incoming edges of each dst
        s = jnp.where(mask, s, -1e30)
        m = jnp.max(s, axis=1, keepdims=True)
        e = jnp.where(mask, jnp.exp(s - m), 0.0)
        denom = jnp.sum(e, axis=1, keepdims=True)
        inv = pl.reciprocal(jnp.maximum(denom, 1e-30), approx=True)      # EUP
        attn = (e * inv).astype(jnp.bfloat16)            # dst w/o in-edges -> 0
        head_outs.append(jnp.dot(attn, v2[:, lo:hi],
                                 preferred_element_type=jnp.float32))    # (bd, d_k)

    # Single lane-dense store of the full (bd, out) slab.
    o_ref[...] = jnp.concatenate(head_outs, axis=1).astype(o_ref.dtype)


def _agg_mix_kernel(*refs, n_agg):
    # refs: t_0..t_{n_agg-1} (br, out) bf16, wt (out, out) bf16, b (1, out) f32,
    #       h (br, in) f32, alpha_row (1, out) f32, o (br, out) f32
    t_refs = refs[:n_agg]
    wt_ref, b_ref, h_ref, alpha_ref, o_ref = refs[n_agg:]
    acc = t_refs[0][...].astype(jnp.float32)
    for r in t_refs[1:]:
        acc = acc + r[...].astype(jnp.float32)
    t = (acc * (1.0 / n_agg)).astype(wt_ref.dtype)       # cross-etype mean
    trans = jnp.dot(t, wt_ref[...], preferred_element_type=jnp.float32) + b_ref[...]
    a = alpha_ref[...]                                   # broadcasts over rows
    # dropout == identity (eval); out = trans*alpha + h*(1-alpha)
    o_ref[...] = trans * a + h_ref[...] * (1.0 - a)


# ------------------------------ wrappers --------------------------------------

def project_kvq(x, wt, b):
    """Fused K/V/Q projection for one node type: (n, in) -> (n, 3*out) bf16."""
    n, in_dim = x.shape
    three_out = wt.shape[1]
    br = _row_block(n)
    return pl.pallas_call(
        _kvq_proj_kernel,
        out_shape=jax.ShapeDtypeStruct((n, three_out), jnp.bfloat16),
        grid=(pl.cdiv(n, br),),
        in_specs=[
            pl.BlockSpec((br, in_dim), lambda i: (i, 0)),
            pl.BlockSpec((in_dim, three_out), lambda i: (0, 0)),
            pl.BlockSpec((1, three_out), lambda i: (0, 0)),
        ],
        out_specs=pl.BlockSpec((br, three_out), lambda i: (i, 0)),
        compiler_params=pltpu.CompilerParams(dimension_semantics=("parallel",)),
    )(x.astype(jnp.bfloat16), wt, b)


def hgt_edge_attention(kvq_dst, kvq_src, att_bd, msg_bd, adj, n_heads, d_k, out_dim):
    n_dst = kvq_dst.shape[0]
    n_src = kvq_src.shape[0]
    bd = _row_block(n_dst)
    kernel = functools.partial(_hgt_edge_kernel, n_heads=n_heads, d_k=d_k,
                               out_dim=out_dim)
    return pl.pallas_call(
        kernel,
        out_shape=jax.ShapeDtypeStruct((n_dst, out_dim), jnp.bfloat16),
        grid=(pl.cdiv(n_dst, bd),),
        in_specs=[
            pl.BlockSpec((bd, 3 * out_dim), lambda i: (i, 0)),     # dst k|v|q
            pl.BlockSpec((n_src, 3 * out_dim), lambda i: (0, 0)),  # src k|v|q (resident)
            pl.BlockSpec((out_dim, out_dim), lambda i: (0, 0)),    # block-diag att
            pl.BlockSpec((out_dim, out_dim), lambda i: (0, 0)),    # block-diag msg
            pl.BlockSpec((bd, n_src), lambda i: (i, 0)),           # adj rows
        ],
        out_specs=pl.BlockSpec((bd, out_dim), lambda i: (i, 0)),
        compiler_params=pltpu.CompilerParams(
            dimension_semantics=("parallel",),
            vmem_limit_bytes=48 * 1024 * 1024),
    )(kvq_dst, kvq_src, att_bd, msg_bd, adj)


def agg_mix(aggs, wt, b, h, alpha_row):
    """Fused cross-etype mean + a_linear + skip mix for one dst node type."""
    n = h.shape[0]
    in_dim = h.shape[1]
    out_dim = wt.shape[1]
    br = _row_block(n)
    n_agg = len(aggs)
    kernel = functools.partial(_agg_mix_kernel, n_agg=n_agg)
    agg_specs = [pl.BlockSpec((br, out_dim), lambda i: (i, 0)) for _ in range(n_agg)]
    return pl.pallas_call(
        kernel,
        out_shape=jax.ShapeDtypeStruct((n, out_dim), jnp.float32),
        grid=(pl.cdiv(n, br),),
        in_specs=agg_specs + [
            pl.BlockSpec((out_dim, out_dim), lambda i: (0, 0)),    # a_linear W^T
            pl.BlockSpec((1, out_dim), lambda i: (0, 0)),          # a_linear bias
            pl.BlockSpec((br, in_dim), lambda i: (i, 0)),          # residual h
            pl.BlockSpec((1, out_dim), lambda i: (0, 0)),          # alpha row
        ],
        out_specs=pl.BlockSpec((br, out_dim), lambda i: (i, 0)),
        compiler_params=pltpu.CompilerParams(dimension_semantics=("parallel",)),
    )(*aggs, wt, b, h, alpha_row)


# --------------------------- parameters & forward -----------------------------

def init_params(key, in_dim, out_dim, num_types, num_relations, n_heads):
    d_k = out_dim // n_heads
    keys = jax.random.split(key, 6)

    def lin_init(k, nt, din, dout):
        k1, k2 = jax.random.split(k)
        bound = 1.0 / math.sqrt(din)
        w = jax.random.uniform(k1, (nt, dout, din), jnp.float32, -bound, bound)
        b = jax.random.uniform(k2, (nt, dout), jnp.float32, -bound, bound)
        return w, b

    kw, kb = lin_init(keys[0], num_types, in_dim, out_dim)
    qw, qb = lin_init(keys[1], num_types, in_dim, out_dim)
    vw, vb = lin_init(keys[2], num_types, in_dim, out_dim)
    aw, ab = lin_init(keys[3], num_types, out_dim, out_dim)
    xav = math.sqrt(6.0 / (d_k + d_k))  # xavier_uniform
    rel_att = jax.random.uniform(keys[4], (num_relations, n_heads, d_k, d_k),
                                 jnp.float32, -xav, xav)
    rel_msg = jax.random.uniform(keys[5], (num_relations, n_heads, d_k, d_k),
                                 jnp.float32, -xav, xav)
    rel_pri = jnp.ones((num_relations, n_heads), jnp.float32)
    skip = jnp.ones((num_types,), jnp.float32)
    return dict(kw=kw, kb=kb, qw=qw, qb=qb, vw=vw, vb=vb, aw=aw, ab=ab,
                rel_att=rel_att, rel_msg=rel_msg, rel_pri=rel_pri, skip=skip)


def prepare_params(params, n_heads, d_k, out_dim):
    """One-time host-side prep: fuse/transpose/scale weights, bf16 cast."""
    sqrt_dk = math.sqrt(d_k)

    # Fused K|V|Q projection weights per node type, pre-transposed, bf16.
    kvq_w = jnp.concatenate([params['kw'], params['vw'], params['qw']], axis=1)  # (T, 3*out, in)
    kvq_wt = jnp.transpose(kvq_w, (0, 2, 1)).astype(jnp.bfloat16)                # (T, in, 3*out)
    kvq_b = jnp.concatenate([params['kb'], params['vb'], params['qb']],
                            axis=1)[:, None, :].astype(jnp.float32)              # (T, 1, 3*out)

    def block_diag(mats):                                                        # (R, H, dk, dk)
        r, hh, d, _ = mats.shape
        eye = jnp.eye(hh, dtype=mats.dtype)
        return jnp.einsum('rhij,hg->rhigj', mats, eye).reshape(r, hh * d, hh * d)

    # Fold relation_pri / sqrt(d_k) into the attention relation matrix.
    att_scaled = params['rel_att'] * (params['rel_pri'] / sqrt_dk)[:, :, None, None]
    att_bd = block_diag(att_scaled).astype(jnp.bfloat16)                         # (R, out, out)
    msg_bd = block_diag(params['rel_msg']).astype(jnp.bfloat16)                  # (R, out, out)

    aw_t = jnp.transpose(params['aw'], (0, 2, 1)).astype(jnp.bfloat16)           # (T, out, out)
    ab = params['ab'][:, None, :].astype(jnp.float32)                            # (T, 1, out)
    alpha = jax.nn.sigmoid(params['skip']).astype(jnp.float32)                   # (T,)
    alpha_rows = jnp.broadcast_to(alpha[:, None, None],
                                  (alpha.shape[0], 1, out_dim)).astype(jnp.float32)
    return dict(kvq_wt=kvq_wt, kvq_b=kvq_b, att_bd=att_bd, msg_bd=msg_bd,
                aw_t=aw_t, ab=ab, alpha_rows=alpha_rows)


def hgt_layer_forward(prep, node_dict, edge_dict, adjs, h, n_heads, d_k, out_dim):
    # 1) K/V/Q projection ONCE per node type (dedup across canonical edge types).
    kvq = {nt: project_kvq(h[nt], prep['kvq_wt'][t_id], prep['kvq_b'][t_id])
           for nt, t_id in node_dict.items()}

    # 2) Per canonical edge type: relation transform + masked edge-softmax + sum.
    per_dst = {nt: [] for nt in node_dict}
    for cet, e_id in edge_dict.items():
        src, _, dst = cet
        per_dst[dst].append(hgt_edge_attention(
            kvq[dst], kvq[src], prep['att_bd'][e_id], prep['msg_bd'][e_id],
            adjs[cet], n_heads, d_k, out_dim))

    # 3) Cross-etype mean + target-specific a_linear + skip mix (fused).
    new_h = {}
    for nt, t_id in node_dict.items():
        aggs = per_dst[nt]
        if not aggs:
            # TODO(synk): node type never appears as a dst -> aggregation is 0.
            aggs = [jnp.zeros((h[nt].shape[0], out_dim), jnp.bfloat16)]
        new_h[nt] = agg_mix(aggs, prep['aw_t'][t_id], prep['ab'][t_id],
                            h[nt], prep['alpha_rows'][t_id])
    return new_h


# --------------------------------- main ---------------------------------------

if __name__ == "__main__":
    in_dim, out_dim, n_heads = 32, 32, 4
    d_k = out_dim // n_heads

    node_dict = {'paper': 0, 'author': 1}
    edge_dict = {('paper', 'written_by', 'author'): 0,
                 ('author', 'writes', 'paper'): 1,
                 ('paper', 'cites', 'paper'): 2}
    num_nodes = {'paper': 16, 'author': 8}

    key = jax.random.PRNGKey(0)
    kp, kh, kg = jax.random.split(key, 3)

    params = init_params(kp, in_dim, out_dim, len(node_dict), len(edge_dict),
                         n_heads)
    prep = prepare_params(params, n_heads, d_k, out_dim)

    hkeys = jax.random.split(kh, len(node_dict))
    h = {nt: jax.random.normal(hkeys[i], (num_nodes[nt], in_dim), jnp.float32)
         for i, nt in enumerate(node_dict)}

    gkeys = jax.random.split(kg, len(edge_dict))
    adjs = {}
    for i, cet in enumerate(edge_dict):
        src, _, dst = cet
        adjs[cet] = jax.random.bernoulli(
            gkeys[i], 0.4, (num_nodes[dst], num_nodes[src])).astype(jnp.bfloat16)

    new_h = hgt_layer_forward(prep, node_dict, edge_dict, adjs, h,
                              n_heads, d_k, out_dim)
    for nt in node_dict:
        jax.block_until_ready(new_h[nt])
        assert new_h[nt].shape == (num_nodes[nt], out_dim)
        assert bool(jnp.all(jnp.isfinite(new_h[nt])))

    print("KERNEL_OK")
</pallas_src>

<mosaic_0001>
module attributes {stable_mosaic.version = 11 : i64} {
  func.func @_kvq_proj_kernel(%arg0: i32, %arg1: memref<16x32xbf16, #tpu.memory_space<vmem>>, %arg2: memref<32x96xbf16, #tpu.memory_space<vmem>>, %arg3: memref<1x96xf32, #tpu.memory_space<vmem>>, %arg4: memref<16x96xbf16, #tpu.memory_space<vmem>>) attributes {dimension_semantics = [#tpu.dimension_semantics<parallel>], iteration_bounds = array<i64: 1>, scalar_prefetch = 0 : i64, scratch_operands = 0 : i64, tpu.core_type = #tpu.core_type<tc>, window_params = [{transform_indices = @transform_0, window_bounds = array<i64: 16, 32>}, {pipeline_mode = #tpu.pipeline_mode<synchronous>, transform_indices = @transform_1, window_bounds = array<i64: 32, 96>}, {pipeline_mode = #tpu.pipeline_mode<synchronous>, transform_indices = @transform_2, window_bounds = array<i64: 1, 96>}, {transform_indices = @transform_3, window_bounds = array<i64: 16, 96>}]} {
    %c0 = arith.constant 0 : index
    %c0_0 = arith.constant 0 : index
    %0 = vector.load %arg1[%c0, %c0_0] : memref<16x32xbf16, #tpu.memory_space<vmem>>, vector<16x32xbf16>
    %c0_1 = arith.constant 0 : index
    %c0_2 = arith.constant 0 : index
    %1 = vector.load %arg2[%c0_1, %c0_2] : memref<32x96xbf16, #tpu.memory_space<vmem>>, vector<32x96xbf16>
    %cst = arith.constant dense<0.000000e+00> : vector<16x96xf32>
    %2 = tpu.matmul %0, %1, %cst {dimension_numbers = #tpu.dot_dimension_numbers<[1], [0], [0], [1], [0, 0, 1, 1], [], []>} : vector<16x32xbf16>, vector<32x96xbf16>, vector<16x96xf32> -> vector<16x96xf32>
    %c0_3 = arith.constant 0 : index
    %c0_4 = arith.constant 0 : index
    %3 = vector.load %arg3[%c0_3, %c0_4] : memref<1x96xf32, #tpu.memory_space<vmem>>, vector<1x96xf32>
    %4 = vector.broadcast %3 : vector<1x96xf32> to vector<16x96xf32>
    %5 = arith.addf %2, %4 : vector<16x96xf32>
    %6 = arith.truncf %5 : vector<16x96xf32> to vector<16x96xbf16>
    %c0_5 = arith.constant 0 : index
    %c0_6 = arith.constant 0 : index
    %7 = vector.load %arg4[%c0_5, %c0_6] : memref<16x96xbf16, #tpu.memory_space<vmem>>, vector<16x96xbf16>
    tpu.vector_store %arg4[%c0_5, %c0_6], %6 {strides = array<i32>} : memref<16x96xbf16, #tpu.memory_space<vmem>>, vector<16x96xbf16>,
    return
  }
  func.func @transform_0(%arg0: i32) -> (i32, i32) {
    %c0_i32 = arith.constant 0 : i32
    %c0_i32_0 = arith.constant 0 : i32
    return %arg0, %c0_i32 : i32, i32
  }
  func.func @transform_1(%arg0: i32) -> (i32, i32) {
    %c0_i32 = arith.constant 0 : i32
    %c0_i32_0 = arith.constant 0 : i32
    %c0_i32_1 = arith.constant 0 : i32
    return %c0_i32, %c0_i32_0 : i32, i32
  }
  func.func @transform_2(%arg0: i32) -> (i32, i32) {
    %c0_i32 = arith.constant 0 : i32
    %c0_i32_0 = arith.constant 0 : i32
    %c0_i32_1 = arith.constant 0 : i32
    return %c0_i32, %c0_i32_0 : i32, i32
  }
  func.func @transform_3(%arg0: i32) -> (i32, i32) {
    %c0_i32 = arith.constant 0 : i32
    %c0_i32_0 = arith.constant 0 : i32
    return %arg0, %c0_i32 : i32, i32
  }
}

</mosaic_0001>

<bundles_post_ra>
// kernel: tpu_custom_call.1
= control target key start
LH: loop header
LB: loop body
LE: loop exit
PB: predicated region body
PF: predicated region fallthrough
CT: control target
= control target key end

     0   :  { %8 = vsyncpa [#allocation3], 0  ;;  %s264_s0 = inlined_call_operand.hbm [shape: bf16[16,32], index: 0, kind: input, shape index: {}]   ;;  %s265_s1 = inlined_call_operand.hbm [shape: bf16[32,96], index: 1, kind: input, shape index: {}]   ;;  %s266_s2 = inlined_call_operand.vmem [shape: f32[1,96], index: 2, kind: input, shape index: {}]   ;;  %s267_s3 = inlined_call_operand.hbm [shape: bf16[16,96], index: 3, kind: output, shape index: {}]  }
   0x1   :  { %9 = vsyncpa [#allocation6], 0 }
   0x2   :  { %10 = vsyncpa [#allocation4], 0  ;;  %s15_s14 = sshll.u32 %s264_s0, 4  ;;  %s218_s15 = smov [#allocation2]   ;;  %s16_s14 = int_to_ptr.hbm [resolvable:$true] %s15_s14 }
   0x3   :  { %s17_s16 = sshll.u32 %s218_s15, 4  ;;  %s28_s19 = sshll.u32 %s265_s1, 4  ;;  %s18_s16 = int_to_ptr.vmem [resolvable:$true] %s17_s16  ;;  %s29_s19 = int_to_ptr.hbm [resolvable:$true] %s28_s19 }
   0x4   :  { %s219_s20 = smov 64   ;;  %s220_s21 = smov 4  }
   0x5   :  { %23 = dma.hbm_to_vmem [thread:$0]  %s16_s14, 128, %s18_s16, [#allocation3], %s219_s20, %s219_s20, %s220_s21  }
   0x6   :  { %s221_s22 = smov [#allocation5]  }
   0x7   :  { %s30_s23 = sshll.u32 %s221_s22, 4  ;;  %s31_s23 = int_to_ptr.vmem [resolvable:$true] %s30_s23 }
   0x8   :  { %36 = dma.hbm_to_vmem [thread:$0]  %s29_s19, 256, %s31_s23, [#allocation6], %s219_s20, %s219_s20, %s220_s21  }
   0x9   :  { %212 = dma.done.wait [#allocation3], 128  }
   0xa   :  { %213 = vsyncadd [#allocation3], 4294967168 }
   0xb   :  { %214 = dma.done.wait [#allocation6], 256  }
   0xc   :  { %215 = vsyncadd [#allocation6], 4294967040  ;;  %v133_v0 = vld [vmem:[#allocation5 + $0x8] sm:$0xff]  ;;  %v132_v1 = vld [vmem:[#allocation5] sm:$0xff]  ;;  %vm75_vm0 = vcmask 261120   ;;  %vm95_vm1 = vcmask 781312  }
   0xd   :  { %85 = vmatpush.bf16.msra.mxu0 %v133_v0  ;;  %v131_v2 = vld [vmem:[#allocation2] sm:$0xff]  ;;  %s222_s24 = smov [#allocation7]   ;;  %s104_s28 = sshll.u32 %s267_s3, 4  ;;  %s105_s28 = int_to_ptr.hbm [resolvable:$true] %s104_s28 }
   0xe   :  { %v139_v3 = vld [vmem:[%s266_s2] ss:$0 sm:$0xff]  ;;  %s102_s25 = sshll.u32 %s222_s24, 4  ;;  %s103_s25 = int_to_ptr.vmem [resolvable:$true] %s102_s25 }
  0x11   :  { %86 = vmatpush.bf16.msra.mxu0 %v132_v1 }
  0x14   :  { %130 = vmatmul.msk.bf16.vlgmr.msra.gmra.mxu0 %vm75_vm0, %v131_v2 }
  0x91   :  { %v88_v4 = vpop.f32.mrf.mxu0 }
  0x92   :  { %v89_v5 = vadd.f32 %v139_v3, %v88_v4 }
  0x94   :  { %v93_v6 = vpack.c.bf16 %v89_v5, %v89_v5 }
  0x96   :  { %96 = vst.msk [vmem:[#allocation7] sm:$0xf] %vm95_vm1, %v93_v6 }
  0x99   :  { %v90_v7 = vpop.f32.mrf.mxu0 }
  0x9a   :  { %v91_v8 = vadd.f32 %v139_v3, %v90_v7 }
  0x9c   :  { %v94_v9 = vpack.c.bf16 %v91_v8, %v91_v8 }
  0x9e   :  { %97 = vst.msk [vmem:[#allocation7 + $0x4] sm:$0xf] %vm95_vm1, %v94_v9 }
  0x9f   :  { %110 = dma.vmem_to_hbm [thread:$0]  %s103_s25, 128, %s105_s28, [#allocation4], %s219_s20, %s219_s20, %s220_s21  }
  0xa0   :  { %216 = dma.done.wait [#allocation4], 128  }
  0xa1   :  { %217 = vsyncadd [#allocation4], 4294967168 }
  0xa2   :  { %115 = vsyncpa [#allocation3], 1 }
  0xa3   :  { %116 = vsyncpa [#allocation6], 1 }
  0xa4   :  { %117 = vsyncpa [#allocation4], 1 }

</bundles_post_ra>
